<compile_context>
chip_gen: v7x
topology: tpu7x:2x2x1
jax: 0.10.0
libtpu: 0.0.40
codegen_flags: <defaults>
</compile_context>

<pallas_src>
import jax
import jax.numpy as jnp
from jax.experimental import pallas as pl
from jax.experimental.pallas import tpu as pltpu


# --------------------------------------------------------------------------
# Pallas kernel: 1x1 conv as (Cout,Cin) @ (Cin, tm) + bias, lane-dense output
# --------------------------------------------------------------------------
def _conv1x1_kernel(x_ref, w_ref, b_ref, o_ref):
    # x_ref : (Cin,  tm)   spatial positions on the lane axis
    # w_ref : (Cout, Cin)  full 1x1 conv weight (tiny, VMEM-resident)
    # b_ref : (Cout, 1)    bias column, broadcast across lanes
    # o_ref : (Cout, tm)   lane-dense output tile
    y = jnp.dot(w_ref[...], x_ref[...], preferred_element_type=jnp.float32)
    o_ref[...] = (y + b_ref[...]).astype(o_ref.dtype)


def _cdiv(a, b):
    return (a + b - 1) // b


def _round_down(x, m):
    return (x // m) * m


# --------------------------------------------------------------------------
# Forward: UP(x) = PixelShuffle(2)(Conv2d(Cin -> 2*Cin, k=1)(x))
# --------------------------------------------------------------------------
def up_forward(params, x, *, tm_max=32768, vmem_tile_budget=16 * 1024 * 1024):
    w, b = params["conv"]                 # w: (Cout, Cin, 1, 1), b: (Cout,)
    n, cin, h, wd = x.shape
    cout = w.shape[0]
    r = 2
    assert cout == 2 * cin and cout % (r * r) == 0

    m = h * wd
    dt = x.dtype
    bpe = jnp.dtype(dt).itemsize

    # --- lane-tile selection: as big as possible, bounded by VMEM budget ----
    # double-buffered input + output tiles dominate VMEM use
    per_lane = (cin + cout) * max(bpe, 4) * 2
    tm_cap = max(128, _round_down(min(tm_max, vmem_tile_budget // per_lane), 128))
    if m <= tm_cap:
        tm_eff = m                         # one full-row block (always layout-legal)
    else:
        tm_eff = tm_cap                    # multiple of 128; last block masked
    n_lane = _cdiv(m, tm_eff)

    # keep total grid >= 2 so the "parallel" axes can feed both v7x TensorCores
    if n * n_lane < 2 and m >= 256:
        tm_eff = ((m // 2 + 127) // 128) * 128
        n_lane = _cdiv(m, tm_eff)

    # --- free views (no HBM passes) ------------------------------------------
    x_flat = x.reshape(n, cin, m)          # (N, Cin, H*W), contiguous view
    w2 = w.reshape(cout, cin)
    b2 = b.reshape(cout, 1)

    flops = 2 * n * m * cin * cout
    bytes_accessed = (n * (cin + cout) * m) * bpe \
        + (cout * cin + cout) * jnp.dtype(w.dtype).itemsize
    cost = pl.CostEstimate(flops=int(flops), transcendentals=0,
                           bytes_accessed=int(bytes_accessed))

    y_flat = pl.pallas_call(
        _conv1x1_kernel,
        out_shape=jax.ShapeDtypeStruct((n, cout, m), dt),
        grid=(n, n_lane),
        in_specs=[
            pl.BlockSpec((None, cin, tm_eff), lambda bi, mi: (bi, 0, mi)),  # x tile
            pl.BlockSpec((cout, cin), lambda bi, mi: (0, 0)),               # weight
            pl.BlockSpec((cout, 1), lambda bi, mi: (0, 0)),                 # bias
        ],
        out_specs=pl.BlockSpec((None, cout, tm_eff), lambda bi, mi: (bi, 0, mi)),
        compiler_params=pltpu.CompilerParams(
            dimension_semantics=("parallel", "parallel"),
            vmem_limit_bytes=48 * 1024 * 1024,
        ),
        cost_estimate=cost,
    )(x_flat, w2, b2)

    # PixelShuffle(2): out[n, c, 2h+i, 2w+j] = y[n, 4c + 2i + j, h, w]
    # TODO(synk): channel->spatial lane interleave has no cheap in-kernel fp32
    # form; it is left to XLA as a pure layout transpose outside the pallas_call.
    cp = cout // (r * r)
    y = y_flat.reshape(n, cp, r, r, h, wd)     # (N, C', i, j, H, W)
    y = y.transpose(0, 1, 4, 2, 5, 3)          # (N, C', H, i, W, j)
    return y.reshape(n, cp, h * r, wd * r)


# --------------------------------------------------------------------------
# Pure-JAX reference (correctness check)
# --------------------------------------------------------------------------
def up_reference(params, x):
    w, b = params["conv"]
    cout, cin = w.shape[0], w.shape[1]
    y = jnp.einsum("nchw,oc->nohw", x, w.reshape(cout, cin))
    y = y + b[None, :, None, None]
    n, co, h, wd = y.shape
    r = 2
    cp = co // (r * r)
    y = y.reshape(n, cp, r, r, h, wd).transpose(0, 1, 4, 2, 5, 3)
    return y.reshape(n, cp, h * r, wd * r).astype(x.dtype)


if __name__ == "__main__":
    B, CIN, H, W = 2, 4, 16, 16
    COUT = 2 * CIN

    key = jax.random.PRNGKey(0)
    kx, kw, kb = jax.random.split(key, 3)
    x = jax.random.normal(kx, (B, CIN, H, W), jnp.float32)
    bound = 1.0 / (CIN ** 0.5)
    w = jax.random.uniform(kw, (COUT, CIN, 1, 1), jnp.float32, -bound, bound)
    b = jax.random.uniform(kb, (COUT,), jnp.float32, -bound, bound)
    params = {"conv": (w, b)}

    out = jax.jit(up_forward)(params, x)
    jax.block_until_ready(out)

    ref = up_reference(params, x)
    assert out.shape == (B, CIN // 2, 2 * H, 2 * W), out.shape
    assert out.dtype == x.dtype
    assert bool(jnp.all(jnp.isfinite(out)))
    assert bool(jnp.allclose(out, ref, atol=1e-5, rtol=1e-5))
    print("KERNEL_OK")
</pallas_src>

<mosaic_0001>
module attributes {stable_mosaic.version = 11 : i64} {
  func.func @_conv1x1_kernel(%arg0: i32, %arg1: i32, %arg2: memref<1x4x256xf32, #tpu.memory_space<vmem>>, %arg3: memref<8x4xf32, #tpu.memory_space<vmem>>, %arg4: memref<8x1xf32, #tpu.memory_space<vmem>>, %arg5: memref<1x8x256xf32, #tpu.memory_space<vmem>>) attributes {dimension_semantics = [#tpu.dimension_semantics<parallel>, #tpu.dimension_semantics<parallel>], iteration_bounds = array<i64: 2, 1>, scalar_prefetch = 0 : i64, scratch_operands = 0 : i64, tpu.core_type = #tpu.core_type<tc>, window_params = [{transform_indices = @transform_0, window_bounds = array<i64: 1, 4, 256>}, {pipeline_mode = #tpu.pipeline_mode<synchronous>, transform_indices = @transform_1, window_bounds = array<i64: 8, 4>}, {pipeline_mode = #tpu.pipeline_mode<synchronous>, transform_indices = @transform_2, window_bounds = array<i64: 8, 1>}, {transform_indices = @transform_3, window_bounds = array<i64: 1, 8, 256>}]} {
    %c0 = arith.constant 0 : index
    %c0_0 = arith.constant 0 : index
    %0 = vector.load %arg3[%c0, %c0_0] : memref<8x4xf32, #tpu.memory_space<vmem>>, vector<8x4xf32>
    %c0_1 = arith.constant 0 : index
    %c0_2 = arith.constant 0 : index
    %c0_3 = arith.constant 0 : index
    %1 = vector.load %arg2[%c0_1, %c0_2, %c0_3] : memref<1x4x256xf32, #tpu.memory_space<vmem>>, vector<1x4x256xf32>
    %2 = vector.shape_cast %1 : vector<1x4x256xf32> to vector<4x256xf32>
    %cst = arith.constant dense<0.000000e+00> : vector<8x256xf32>
    %3 = tpu.matmul %0, %2, %cst {dimension_numbers = #tpu.dot_dimension_numbers<[1], [0], [0], [1], [0, 0, 1, 1], [], []>} : vector<8x4xf32>, vector<4x256xf32>, vector<8x256xf32> -> vector<8x256xf32>
    %c0_4 = arith.constant 0 : index
    %c0_5 = arith.constant 0 : index
    %4 = vector.load %arg4[%c0_4, %c0_5] : memref<8x1xf32, #tpu.memory_space<vmem>>, vector<8x1xf32>
    %5 = vector.broadcast %4 : vector<8x1xf32> to vector<8x256xf32>
    %6 = arith.addf %3, %5 : vector<8x256xf32>
    %c0_6 = arith.constant 0 : index
    %c0_7 = arith.constant 0 : index
    %c0_8 = arith.constant 0 : index
    %7 = vector.load %arg5[%c0_6, %c0_7, %c0_8] : memref<1x8x256xf32, #tpu.memory_space<vmem>>, vector<1x8x256xf32>
    %8 = vector.shape_cast %7 : vector<1x8x256xf32> to vector<8x256xf32>
    %9 = vector.shape_cast %6 : vector<8x256xf32> to vector<1x8x256xf32>
    tpu.vector_store %arg5[%c0_6, %c0_7, %c0_8], %9 {strides = array<i32>} : memref<1x8x256xf32, #tpu.memory_space<vmem>>, vector<1x8x256xf32>,
    return
  }
  func.func @transform_0(%arg0: i32, %arg1: i32) -> (i32, i32, i32) {
    %c0_i32 = arith.constant 0 : i32
    %c0_i32_0 = arith.constant 0 : i32
    return %arg0, %c0_i32, %arg1 : i32, i32, i32
  }
  func.func @transform_1(%arg0: i32, %arg1: i32) -> (i32, i32) {
    %c0_i32 = arith.constant 0 : i32
    %c0_i32_0 = arith.constant 0 : i32
    %c0_i32_1 = arith.constant 0 : i32
    return %c0_i32, %c0_i32_0 : i32, i32
  }
  func.func @transform_2(%arg0: i32, %arg1: i32) -> (i32, i32) {
    %c0_i32 = arith.constant 0 : i32
    %c0_i32_0 = arith.constant 0 : i32
    %c0_i32_1 = arith.constant 0 : i32
    return %c0_i32, %c0_i32_0 : i32, i32
  }
  func.func @transform_3(%arg0: i32, %arg1: i32) -> (i32, i32, i32) {
    %c0_i32 = arith.constant 0 : i32
    %c0_i32_0 = arith.constant 0 : i32
    return %arg0, %c0_i32, %arg1 : i32, i32, i32
  }
}

</mosaic_0001>

<bundles_post_ra>
// kernel: up_forward.1
= control target key start
LH: loop header
LB: loop body
LE: loop exit
PB: predicated region body
PF: predicated region fallthrough
CT: control target
= control target key end

     0   :  { %s479_s12 = smov 0   ;;  %s481_s13 = smov 0   ;;  %s518_s0 = inlined_call_operand.vmem [shape: f32[2,4,256], index: 0, kind: input, shape index: {}]   ;;  %s519_s1 = inlined_call_operand.vmem [shape: f32[8,4], index: 1, kind: input, shape index: {}]   ;;  %s520_s2 = inlined_call_operand.vmem [shape: f32[8,1], index: 2, kind: input, shape index: {}]   ;;  %s521_s3 = inlined_call_operand.vmem [shape: f32[2,8,256], index: 3, kind: output, shape index: {}]  }
   0x1   :  { %s483_s14 = smov 0  }
   0x2 LB: > { %s25_s15 = sadd.s32 1, %s451_s13  ;;  %p393_p0 = scmp.ge.s32.totalorder %s455_s14, 1  ;;  %s455_s14 = sphi %s483_s14, %s13_s14   ;;  %s451_s13 = sphi %s481_s13, %s523_s13   ;;  %s447_s12 = sphi %s479_s12, %s522_s12  }
   0x3   : > { %p27_p1 = scmp.ge.s32.totalorder %s25_s15, 2  ;;  %p158_p2 = scmp.lt.s32.totalorder %s455_s14, 3 }
   0x5   : > { %s525_s15 = smov (%p27_p1, %s25_s15), 0  ;;  %p159_p3 = pnand %p393_p0, %p158_p2 }
   0x6   : > { %p191_p4 = scmp.lt.s32.totalorder (!%p159_p3), %s447_s12, 1  ;;  %v457_v0 = vmov (!%p159_p3), 0.0   ;;  %v458_v1 = vmov (!%p159_p3), 0   ;;  %v212_v2 = vld [vmem:[%s520_s2] sm:$0xff] (!%p159_p3)  ;;  %vm224_vm0 = vcmask (!%p159_p3), 1043456   ;;  %vm220_vm1 = vcmask (!%p159_p3), 31744  }
   0x7   : > { %162 = sbr.rel (%p159_p3) target bundleno = 238 (0xee), region = 32  ;;  %293 = vmatprep.mubr.f32.mxu0 (!%p159_p3), %v457_v0  ;;  %431 = vset.pattern.permute.xlu0 (!%p159_p3), %v458_v1  ;;  %v210_v5 = vld [vmem:[%s519_s1] sm:$0xff] (!%p159_p3) }
   0x8   : > { %215 = vperm.xlu0 (!%p159_p3), %431, %v212_v2  }
   0xe   : > { %s527_s12 = smov (!%p191_p4, %s447_s12), 1 }
   0xf   : > { %s403_s18 = sshll.u32 %s527_s12, 3  ;;  %s404_s24 = sshll.u32 %s527_s12, 4 }
  0x10   : > { %s198_s21 = scalar_lea.vmem %s518_s0, %s403_s18  ;;  %s208_s27 = scalar_lea.vmem %s521_s3, %s404_s24 }
  0x11   : > { %v211_v3 = vld [vmem:[%s198_s21] sm:$0xff] }
  0x12   : > { %v219_v4 = vcombine.high %v211_v3, %v211_v3 }
  0x14   : > { %398 = vmatprep.subr.msk.mxu0 %vm224_vm0, %v219_v4 }
  0x15   : > { %399 = vmatpush1.msk.msra.mxu0 %vm224_vm0, %v211_v3 }
  0x16   : > { %400 = vmatmul.mubr.msk.f32.vlgmr.msra.gmra.mrb[0].mxu0 %vm220_vm1, %v210_v5 }
  0x87   : > { %v216_v6 = vpop.permute.xlu0 %215 }
  0xe9   : > { %v295_v7 = vpop.f32.mrb[0].mxu0 }
  0xea   : > { %v296_v8 = vadd.f32 %v295_v7, %v216_v6  ;;  %v297_v9 = vpop.f32.mrb[1].mxu0 }
  0xeb   : > { %v298_v10 = vadd.f32 %v297_v9, %v216_v6 }
  0xec   : > { %300 = vst [vmem:[%s208_s27] sm:$0xff] %v296_v8 }
  0xed   : > { %301 = vst [vmem:[%s208_s27 + $0x8] sm:$0xff] %v298_v10 }
  0xee PF: > { %s13_s14 = sadd.s32 1, %s455_s14   ;;  %s522_s12 = smov %s451_s13 }
  0xef   : > { %p10_p5 = scmp.ge.s32.totalorder %s13_s14, 4   ;;  %s523_s13 = smov %s525_s15 }
  0xf1   :  { %12 = sbr.rel (!%p10_p5) target bundleno = 2 (0x2), region = 62 }

</bundles_post_ra>
